<compile_context>
chip_gen: v5e
topology: v5e:2x2
jax: 0.10.0
libtpu: 0.0.40
codegen_flags: <defaults>
</compile_context>

<pallas_src>
import math

import jax
import jax.numpy as jnp
from jax import lax
from jax.experimental import pallas as pl
from jax.experimental.pallas import tpu as pltpu


def _mlp_kernel(x_ref, *refs):
    """Fused MLP forward.

    x_ref  : (batch_tile, F) input tile, natural row-major layout (any float dtype).
    refs   : (w0, b0, w1, b1, ..., w_last, b_last, out_ref) where
             w_i    : (h_i, h_{i-1}) bf16  (PyTorch (out, in) layout), hidden layers
             b_i    : (h_i, 1)       f32
             w_last : (h_last, 1)    f32   (column vector; consumed on the VPU)
             b_last : (1, 1)         f32
    out_ref: (1, batch_tile) f32 -- batch on the lane axis (lane-dense store).
    """
    out_ref = refs[-1]
    params = refs[:-1]
    n_hidden = len(params) // 2 - 1          # number of Linear+ReLU layers

    # Layer 0: contract the LAST dims of w0 (h0, F) and the x tile (bt, F) so
    # the result lands features-major (h0, bt) with batch on the lane axis.
    # bf16 MXU inputs, f32 accumulation; bias-add / ReLU stay f32 (VPU).
    x = x_ref[...].astype(jnp.bfloat16)                            # (bt, F)
    h = lax.dot_general(
        params[0][...], x, (((1,), (1,)), ((), ())),
        preferred_element_type=jnp.float32) + params[1][...]
    h = jnp.maximum(h, 0.0)

    # Remaining hidden layers: plain (out, in) @ (in, bt) MXU matmuls.
    for i in range(1, n_hidden):
        w = params[2 * i][...]                                     # bf16 (h_i, h_{i-1})
        b = params[2 * i + 1][...]                                 # f32  (h_i, 1)
        h = jnp.dot(w, h.astype(jnp.bfloat16),
                    preferred_element_type=jnp.float32) + b
        h = jnp.maximum(h, 0.0)

    # Final out=1 layer on the VPU/XLU (broadcast-mul + sublane reduction):
    # a 1 x h_last matmul would waste a full MXU pass + weight load per step.
    w_last = params[-2][...]                                       # (h_last, 1) f32
    b_last = params[-1][...]                                       # (1, 1)      f32
    out = jnp.sum(w_last * h, axis=0, keepdims=True) + b_last      # (1, bt)
    out_ref[...] = out.astype(out_ref.dtype)                       # lane-dense store


_TILE_CANDIDATES = (4096, 2048, 1024, 512, 256)


def _choose_batch_tile(batch):
    """Pick a lane-dense batch tile.

    Preference order:
      1. a 256-multiple (fills v6e/v7x's 256-wide MXU N dim) that divides the
         batch exactly with an EVEN grid count >= 2 (even split across v7x's
         two TensorCores on the "parallel" axis),
      2. any exact divisor giving >= 2 grid steps,
      3. a single full-batch block (small / odd batches -> no padding at all),
      4. tile 2048 with a ragged last block (Pallas masks the edge writeback).
    Capped at 4096: big enough to amortize the ~0.35us/step + per-matmul fixed
    costs, still <1 MiB of VMEM even double-buffered.
    """
    divisors = [t for t in _TILE_CANDIDATES if batch % t == 0]
    for t in divisors:
        n = batch // t
        if n >= 2 and n % 2 == 0:
            return t
    for t in divisors:
        if batch // t >= 2:
            return t
    if batch <= _TILE_CANDIDATES[0]:
        return batch
    return 2048


def mlp_forward(x, weights, biases, *, batch_tile=None):
    """Run the fused MLP Pallas kernel.

    x:       (B, input_size) array (f32 or bf16), natural row-major layout.
    weights: list of (out_i, in_i) arrays (PyTorch nn.Linear layout); last out=1.
    biases:  list of (out_i,) arrays.
    returns: (B, 1) float32.
    """
    x = jnp.asarray(x)
    B, F = x.shape
    assert len(weights) >= 2, "NET requires at least one hidden layer"
    assert weights[0].shape[1] == F
    assert weights[-1].shape[0] == 1

    if batch_tile is None:
        batch_tile = _choose_batch_tile(B)
    grid_n = pl.cdiv(B, batch_tile)

    # x stays in its natural layout/dtype: one contiguous (bt, F) DMA per step,
    # no wrapper-side transpose / cast / pad passes.
    in_specs = [pl.BlockSpec((batch_tile, F), lambda i: (i, 0))]
    args = [x]
    param_bytes = 0
    flops_per_row = 0

    # Hidden layers: bf16 weights in PyTorch (out, in) layout, f32 (out, 1) biases.
    for w, b in zip(weights[:-1], biases[:-1]):
        wb = jnp.asarray(w, jnp.bfloat16)
        bc = jnp.asarray(b, jnp.float32).reshape(-1, 1)
        # Grid-invariant blocks (constant index_map): fetched once, kept resident.
        in_specs.append(pl.BlockSpec(wb.shape, lambda i: (0, 0)))
        in_specs.append(pl.BlockSpec(bc.shape, lambda i: (0, 0)))
        args += [wb, bc]
        param_bytes += wb.size * 2 + bc.size * 4
        flops_per_row += 2 * w.shape[0] * w.shape[1]

    # Final out=1 layer: column-vector weight, kept f32 (consumed on the VPU).
    w_last = jnp.asarray(weights[-1], jnp.float32).reshape(-1, 1)   # (h_last, 1)
    b_last = jnp.asarray(biases[-1], jnp.float32).reshape(1, 1)     # (1, 1)
    in_specs.append(pl.BlockSpec(w_last.shape, lambda i: (0, 0)))
    in_specs.append(pl.BlockSpec(b_last.shape, lambda i: (0, 0)))
    args += [w_last, b_last]
    param_bytes += (w_last.size + b_last.size) * 4
    flops_per_row += 2 * w_last.size

    out_specs = pl.BlockSpec((1, batch_tile), lambda i: (0, i))

    cost = pl.CostEstimate(
        flops=flops_per_row * B,
        transcendentals=0,
        bytes_accessed=x.size * x.dtype.itemsize + param_bytes + B * 4,
    )

    out = pl.pallas_call(
        _mlp_kernel,
        out_shape=jax.ShapeDtypeStruct((1, B), jnp.float32),
        grid=(grid_n,),
        in_specs=in_specs,
        out_specs=out_specs,
        compiler_params=pltpu.CompilerParams(
            dimension_semantics=("parallel",)),
        cost_estimate=cost,
    )(*args)

    return out.reshape(B, 1)


def init_net_params(key, input_size, hids_size):
    """nn.Linear default init: U(-1/sqrt(fan_in), +1/sqrt(fan_in)).
    Weights kept in PyTorch layout (out, in); biases (out,)."""
    dims = [input_size] + list(hids_size) + [1]
    weights, biases = [], []
    for i in range(len(dims) - 1):
        fan_in, fan_out = dims[i], dims[i + 1]
        key, kw, kb = jax.random.split(key, 3)
        bound = 1.0 / math.sqrt(fan_in)
        w = jax.random.uniform(kw, (fan_out, fan_in), jnp.float32, -bound, bound)
        b = jax.random.uniform(kb, (fan_out,), jnp.float32, -bound, bound)
        weights.append(w)
        biases.append(b)
    return weights, biases


def mlp_forward_ref(x, weights, biases, *, emulate_bf16=False):
    """Pure-JAX reference (PyTorch forward semantics).  If emulate_bf16,
    quantize the MXU inputs of every layer except the last to bf16 exactly as
    the kernel does (the last layer runs fully in f32 on the VPU there)."""
    h = x
    n = len(weights)
    for i, (w, b) in enumerate(zip(weights, biases)):
        if emulate_bf16 and i < n - 1:
            hh, ww = h.astype(jnp.bfloat16), w.astype(jnp.bfloat16)
        else:
            hh, ww = h, w
        h = jnp.dot(hh, ww.T, preferred_element_type=jnp.float32) + b[None, :]
        if i < n - 1:
            h = jnp.maximum(h, 0.0)
    return h


if __name__ == "__main__":
    key = jax.random.PRNGKey(0)

    input_size = 16 * 3          # module default: 48
    hids_size = [32, 32]         # hidden layer sizes (module requires non-empty)
    batch = 512                  # -> tile 256, grid of 2 "parallel" steps

    kparam, kx = jax.random.split(key)
    weights, biases = init_net_params(kparam, input_size, hids_size)
    x = jax.random.normal(kx, (batch, input_size), jnp.float32)

    out = jax.block_until_ready(mlp_forward(x, weights, biases))
    assert out.shape == (batch, 1), out.shape

    ref_q = mlp_forward_ref(x, weights, biases, emulate_bf16=True)
    ref_f = mlp_forward_ref(x, weights, biases)
    assert jnp.allclose(out, ref_q, atol=2e-3, rtol=2e-3), "mismatch vs bf16-emulated reference"
    assert jnp.allclose(out, ref_f, atol=1.5e-1, rtol=1.5e-1), "mismatch vs f32 reference"

    # Tiny, non-tile-aligned batch -> single full-batch block path (no padding).
    out_small = jax.block_until_ready(mlp_forward(x[:8], weights, biases))
    assert out_small.shape == (8, 1), out_small.shape
    assert jnp.allclose(out_small, ref_q[:8], atol=2e-3, rtol=2e-3), "mismatch on small batch"

    print("KERNEL_OK")
</pallas_src>

<mosaic_0001>
module attributes {stable_mosaic.version = 11 : i64} {
  func.func @_mlp_kernel(%arg0: i32, %arg1: memref<256x48xf32, #tpu.memory_space<vmem>>, %arg2: memref<32x48xbf16, #tpu.memory_space<vmem>>, %arg3: memref<32x1xf32, #tpu.memory_space<vmem>>, %arg4: memref<32x32xbf16, #tpu.memory_space<vmem>>, %arg5: memref<32x1xf32, #tpu.memory_space<vmem>>, %arg6: memref<32x1xf32, #tpu.memory_space<vmem>>, %arg7: memref<1x1xf32, #tpu.memory_space<vmem>>, %arg8: memref<1x256xf32, #tpu.memory_space<vmem>>) attributes {dimension_semantics = [#tpu.dimension_semantics<parallel>], iteration_bounds = array<i64: 2>, scalar_prefetch = 0 : i64, scratch_operands = 0 : i64, tpu.core_type = #tpu.core_type<tc>, window_params = [{transform_indices = @transform_0, window_bounds = array<i64: 256, 48>}, {pipeline_mode = #tpu.pipeline_mode<synchronous>, transform_indices = @transform_1, window_bounds = array<i64: 32, 48>}, {pipeline_mode = #tpu.pipeline_mode<synchronous>, transform_indices = @transform_2, window_bounds = array<i64: 32, 1>}, {pipeline_mode = #tpu.pipeline_mode<synchronous>, transform_indices = @transform_3, window_bounds = array<i64: 32, 32>}, {pipeline_mode = #tpu.pipeline_mode<synchronous>, transform_indices = @transform_4, window_bounds = array<i64: 32, 1>}, {pipeline_mode = #tpu.pipeline_mode<synchronous>, transform_indices = @transform_5, window_bounds = array<i64: 32, 1>}, {pipeline_mode = #tpu.pipeline_mode<synchronous>, transform_indices = @transform_6, window_bounds = array<i64: 1, 1>}, {transform_indices = @transform_7, window_bounds = array<i64: 1, 256>}]} {
    %c0 = arith.constant 0 : index
    %c0_0 = arith.constant 0 : index
    %0 = vector.load %arg1[%c0, %c0_0] : memref<256x48xf32, #tpu.memory_space<vmem>>, vector<256x48xf32>
    %1 = arith.truncf %0 : vector<256x48xf32> to vector<256x48xbf16>
    %c0_1 = arith.constant 0 : index
    %c0_2 = arith.constant 0 : index
    %2 = vector.load %arg2[%c0_1, %c0_2] : memref<32x48xbf16, #tpu.memory_space<vmem>>, vector<32x48xbf16>
    %cst = arith.constant dense<0.000000e+00> : vector<32x256xf32>
    %3 = tpu.matmul %2, %1, %cst {dimension_numbers = #tpu.dot_dimension_numbers<[1], [1], [0], [0], [0, 0, 1, 0], [], []>} : vector<32x48xbf16>, vector<256x48xbf16>, vector<32x256xf32> -> vector<32x256xf32>
    %c0_3 = arith.constant 0 : index
    %c0_4 = arith.constant 0 : index
    %4 = vector.load %arg3[%c0_3, %c0_4] : memref<32x1xf32, #tpu.memory_space<vmem>>, vector<32x1xf32>
    %5 = vector.broadcast %4 : vector<32x1xf32> to vector<32x256xf32>
    %6 = arith.addf %3, %5 : vector<32x256xf32>
    %cst_5 = arith.constant 0.000000e+00 : f32
    %7 = vector.broadcast %cst_5 : f32 to vector<32x256xf32>
    %8 = arith.maximumf %6, %7 : vector<32x256xf32>
    %c0_6 = arith.constant 0 : index
    %c0_7 = arith.constant 0 : index
    %9 = vector.load %arg4[%c0_6, %c0_7] : memref<32x32xbf16, #tpu.memory_space<vmem>>, vector<32x32xbf16>
    %c0_8 = arith.constant 0 : index
    %c0_9 = arith.constant 0 : index
    %10 = vector.load %arg5[%c0_8, %c0_9] : memref<32x1xf32, #tpu.memory_space<vmem>>, vector<32x1xf32>
    %11 = arith.truncf %8 : vector<32x256xf32> to vector<32x256xbf16>
    %cst_10 = arith.constant dense<0.000000e+00> : vector<32x256xf32>
    %12 = tpu.matmul %9, %11, %cst_10 {dimension_numbers = #tpu.dot_dimension_numbers<[1], [0], [0], [1], [0, 0, 1, 1], [], []>} : vector<32x32xbf16>, vector<32x256xbf16>, vector<32x256xf32> -> vector<32x256xf32>
    %13 = vector.broadcast %10 : vector<32x1xf32> to vector<32x256xf32>
    %14 = arith.addf %12, %13 : vector<32x256xf32>
    %cst_11 = arith.constant 0.000000e+00 : f32
    %15 = vector.broadcast %cst_11 : f32 to vector<32x256xf32>
    %16 = arith.maximumf %14, %15 : vector<32x256xf32>
    %c0_12 = arith.constant 0 : index
    %c0_13 = arith.constant 0 : index
    %17 = vector.load %arg6[%c0_12, %c0_13] : memref<32x1xf32, #tpu.memory_space<vmem>>, vector<32x1xf32>
    %c0_14 = arith.constant 0 : index
    %c0_15 = arith.constant 0 : index
    %18 = vector.load %arg7[%c0_14, %c0_15] : memref<1x1xf32, #tpu.memory_space<vmem>>, vector<1x1xf32>
    %19 = vector.broadcast %17 : vector<32x1xf32> to vector<32x256xf32>
    %20 = arith.mulf %19, %16 : vector<32x256xf32>
    %cst_16 = arith.constant dense<0.000000e+00> : vector<256xf32>
    %21 = vector.multi_reduction <add>, %20, %cst_16 [0] : vector<32x256xf32> to vector<256xf32>
    %22 = vector.shape_cast %21 : vector<256xf32> to vector<1x256xf32>
    %23 = vector.broadcast %18 : vector<1x1xf32> to vector<1x256xf32>
    %24 = arith.addf %22, %23 : vector<1x256xf32>
    %c0_17 = arith.constant 0 : index
    %c0_18 = arith.constant 0 : index
    %25 = vector.load %arg8[%c0_17, %c0_18] : memref<1x256xf32, #tpu.memory_space<vmem>>, vector<1x256xf32>
    tpu.vector_store %arg8[%c0_17, %c0_18], %24 {strides = array<i32>} : memref<1x256xf32, #tpu.memory_space<vmem>>, vector<1x256xf32>,
    return
  }
  func.func @transform_0(%arg0: i32) -> (i32, i32) {
    %c0_i32 = arith.constant 0 : i32
    %c0_i32_0 = arith.constant 0 : i32
    return %arg0, %c0_i32 : i32, i32
  }
  func.func @transform_1(%arg0: i32) -> (i32, i32) {
    %c0_i32 = arith.constant 0 : i32
    %c0_i32_0 = arith.constant 0 : i32
    %c0_i32_1 = arith.constant 0 : i32
    return %c0_i32, %c0_i32_0 : i32, i32
  }
  func.func @transform_2(%arg0: i32) -> (i32, i32) {
    %c0_i32 = arith.constant 0 : i32
    %c0_i32_0 = arith.constant 0 : i32
    %c0_i32_1 = arith.constant 0 : i32
    return %c0_i32, %c0_i32_0 : i32, i32
  }
  func.func @transform_3(%arg0: i32) -> (i32, i32) {
    %c0_i32 = arith.constant 0 : i32
    %c0_i32_0 = arith.constant 0 : i32
    %c0_i32_1 = arith.constant 0 : i32
    return %c0_i32, %c0_i32_0 : i32, i32
  }
  func.func @transform_4(%arg0: i32) -> (i32, i32) {
    %c0_i32 = arith.constant 0 : i32
    %c0_i32_0 = arith.constant 0 : i32
    %c0_i32_1 = arith.constant 0 : i32
    return %c0_i32, %c0_i32_0 : i32, i32
  }
  func.func @transform_5(%arg0: i32) -> (i32, i32) {
    %c0_i32 = arith.constant 0 : i32
    %c0_i32_0 = arith.constant 0 : i32
    %c0_i32_1 = arith.constant 0 : i32
    return %c0_i32, %c0_i32_0 : i32, i32
  }
  func.func @transform_6(%arg0: i32) -> (i32, i32) {
    %c0_i32 = arith.constant 0 : i32
    %c0_i32_0 = arith.constant 0 : i32
    %c0_i32_1 = arith.constant 0 : i32
    return %c0_i32, %c0_i32_0 : i32, i32
  }
  func.func @transform_7(%arg0: i32) -> (i32, i32) {
    %c0_i32 = arith.constant 0 : i32
    %c0_i32_0 = arith.constant 0 : i32
    return %c0_i32, %arg0 : i32, i32
  }
}

</mosaic_0001>

<bundles_post_ra>
// kernel: tpu_custom_call.1
= control target key start
LH: loop header
LB: loop body
LE: loop exit
PB: predicated region body
PF: predicated region fallthrough
CT: control target
= control target key end

     0   :  { %s1086_s0 = inlined_call_operand.vmem [shape: f32[512,48], index: 0, kind: input, shape index: {}]   ;;  %s1087_s1 = inlined_call_operand.vmem [shape: bf16[32,48], index: 1, kind: input, shape index: {}]   ;;  %s1088_s2 = inlined_call_operand.vmem [shape: f32[32,1], index: 2, kind: input, shape index: {}]   ;;  %s1089_s3 = inlined_call_operand.vmem [shape: bf16[32,32], index: 3, kind: input, shape index: {}]   ;;  %s1090_s4 = inlined_call_operand.vmem [shape: f32[32,1], index: 4, kind: input, shape index: {}]   ;;  %s1091_s5 = inlined_call_operand.vmem [shape: f32[32,1], index: 5, kind: input, shape index: {}]   ;;  %s1092_s6 = inlined_call_operand.<no memory space> [shape: f32[1,1], index: 6, kind: input, shape index: {}]   ;;  %s1093_s7 = inlined_call_operand.hbm [shape: f32[1,512], index: 7, kind: output, shape index: {}]  }
   0x1   :  { %v12_v0 = vstv %s1092_s6 }
   0x2   :  { %13 = vst [vmem:[#allocation2] sm:$0x1] %v12_v0 }
   0x3   :  { %14 = vsyncpa [#allocation4], 0 }
   0x4   :  { %16 = vsyncpa [#allocation4 + $0x1], 0  ;;  %s900_s26 = smov 0   ;;  %s902_s27 = smov 0  }
   0x5   :  { %s904_s28 = smov 0   ;;  %s906_s29 = smov 0  }
   0x6 LB: > { %s921_s6 = sadd.s32 4294967295, %s854_s29   ;;  %s710_s30 = sadd.s32 4294967294, %s854_s29   ;;  %s854_s29 = sphi %s906_s29, %s1099_s29   ;;  %s850_s28 = sphi %s904_s28, %s1098_s28   ;;  %s846_s27 = sphi %s902_s27, %s1097_s27   ;;  %s842_s26 = sphi %s900_s26, %s1096_s26  }
   0x7   : > { %s925_s8 = sadd.s32 1, %s854_s29   ;;  %s181_s9 = sadd.s32 1, %s850_s28 }
   0x8   : > { %s178_s10 = ssub.s32 %s854_s29, %s925_s8  ;;  %p191_p0 = scmp.ne.s32.totalorder %s850_s28, %s846_s27 }
   0x9   : > { %p179_p1 = scmp.eq.s32.totalorder %s178_s10, 0  ;;  %p192_p2 = scmp.eq.s32.totalorder %s921_s6, 1 }
   0xa   : > { %p197_p3 = scmp.ne.s32.totalorder %s846_s27, %s842_s26  ;;  %p198_p4 = scmp.eq.s32.totalorder %s710_s30, 1 }
   0xb   : > { %s936_s11 = scalar_select %p179_p1, %s850_s28, %s181_s9  }
   0xc   : > { %p938_p5 = por %p192_p2, %p191_p0  ;;  %p942_p6 = por %p198_p4, %p197_p3 }
   0xd   : > { %p713_p7 = scmp.ge.s32.totalorder %s854_s29, 1  ;;  %p243_p8 = scmp.lt.s32.totalorder %s854_s29, 3 }
   0xf   : > { %p244_p9 = pnand %p713_p7, %p243_p8 }
  0x10   : > { %s715_s14 = sshll.u32 (!%p244_p9), %s921_s6, 5  ;;  %s272_s21 = sand.u32 (!%p244_p9), 1, %s846_s27  }
  0x11   : > { %247 = sbr.rel (%p244_p9) target bundleno = 440 (0x1b8), region = 48  ;;  %p276_p10 = scmp.lt.s32.totalorder (!%p244_p9), %s715_s14, 63 }
  0x12   : > { %s714_s22 = sshll.u32 (!%p244_p9), %s272_s21, 1  ;;  %s742_s23 = sshll.u32 (!%p244_p9), %s921_s6, 1 }
  0x13   : > { %s646_s30 = scalar_lea.hbm (!%p244_p9), %s1093_s7, %s742_s23  ;;  %s274_s9 = scalar_lea.vmem (!%p244_p9), [#allocation3], %s714_s22 }
  0x14   : > { %s648_s10 = sshll.u32 (!%p244_p9), %s274_s9, 4  ;;  %s636_s6 = scalar_lea.sflag (!%p244_p9), [#allocation4], %s272_s21  ;;  %s649_s10 = int_to_ptr.vmem [resolvable:$true] %s648_s10 }
  0x16   : > { %s1101_s14 = smov (!%p276_p10, %s715_s14), 63  ;;  %vm369_vm0 = vcmask 392192   ;;  %v337_v38 = vld [vmem:[%s1088_s2 + $0x10] sm:$0xff]  ;;  %v856_v40 = vmov 0   ;;  %v338_v47 = vld [vmem:[%s1088_s2 + $0x18] sm:$0xff]  ;;  %v335_v48 = vld [vmem:[%s1088_s2] sm:$0xff] }
  0x17   : > { %s716_s15 = sshll.u32 %s1101_s14, 3  ;;  %789 = vset.pattern.permute.xlu0 %v856_v40  ;;  %790 = vset.pattern.permute.xlu1 %v856_v40  ;;  %v336_v55 = vld [vmem:[%s1088_s2 + $0x8] sm:$0xff]  ;;  %v476_v58 = vld [vmem:[%s1090_s4 + $0x10] sm:$0xff]  ;;  %vm512_vm1 = vcmask 261120   ;;  %s650_s14 = sshll.u32 %s646_s30, 4  ;;  %vm627_vm2 = vcmask 1040384   ;;  %s651_s14 = int_to_ptr.hbm [resolvable:$true] %s650_s14 }
  0x18   : > { %s952_s18 = scalar_lea.vmem %s1086_s0, %s716_s15  ;;  %351 = vperm.xlu0 %789, %v337_v38   ;;  %791 = vset.pattern.permute.xlu2 %v856_v40  ;;  %v475_v40 = vld [vmem:[%s1090_s4 + $0x8] sm:$0xff]  ;;  %s806_s15 = sshra.s32 %s651_s14, 4  ;;  %s807_s15 = int_to_ptr.hbm [resolvable:$true] %s806_s15 }
  0x19   : > { %v297_v1 = vld [vmem:[%s952_s18 + $0x70] sm:$0xff]  ;;  %v298_v2 = vld [vmem:[%s952_s18 + $0x78] sm:$0xff]  ;;  %v295_v7 = vld [vmem:[%s952_s18 + $0x60] sm:$0xff]  ;;  %341 = vperm.xlu1 %790, %v335_v48   ;;  %s808_s16 = scalar_lea.hbm %s807_s15, 2  ;;  %p813_p0 = scmp.lt.s32.totalorder %s807_s15, %s1093_s7 }
  0x1a   : > { %v313_v3 = vld [vmem:[%s952_s18 + $0xf0] sm:$0xff]  ;;  %v322_v4 = vpack.c.bf16 %v298_v2, %v297_v1  ;;  %v314_v5 = vld [vmem:[%s952_s18 + $0xf8] sm:$0xff]  ;;  %v296_v8 = vld [vmem:[%s952_s18 + $0x68] sm:$0xff]  ;;  %p809_p11 = scmp.ne.s32.totalorder %s807_s15, %s808_s16 }
  0x1b   : > { %v330_v6 = vpack.c.bf16 %v314_v5, %v313_v3  ;;  %v311_v10 = vld [vmem:[%s952_s18 + $0xe0] sm:$0xff]  ;;  %v312_v11 = vld [vmem:[%s952_s18 + $0xe8] sm:$0xff]  ;;  %v321_v13 = vpack.c.bf16 %v296_v8, %v295_v7  ;;  %v293_v17 = vld [vmem:[%s952_s18 + $0x50] sm:$0xff] }
  0x1c   : > { %v398_v9 = vsel %vm369_vm0, %v322_v4, 0  ;;  %v329_v14 = vpack.c.bf16 %v312_v11, %v311_v10  ;;  %v294_v18 = vld [vmem:[%s952_s18 + $0x58] sm:$0xff]  ;;  %v309_v19 = vld [vmem:[%s952_s18 + $0xd0] sm:$0xff]  ;;  %v291_v25 = vld [vmem:[%s952_s18 + $0x40] sm:$0xff]  ;;  %p810_p12 = pnand %p809_p11, %p938_p5 }
  0x1d   : > { %424 = vmatpush.bf16.xpose.msra.mxu0 %v398_v9  ;;  %v422_v12 = vsel %vm369_vm0, %v330_v6, 0  ;;  %v395_v15 = vsel %vm369_vm0, %v321_v13, 0  ;;  %v310_v20 = vld [vmem:[%s952_s18 + $0xd8] sm:$0xff]  ;;  %v320_v21 = vpack.c.bf16 %v294_v18, %v293_v17  ;;  %v292_v26 = vld [vmem:[%s952_s18 + $0x48] sm:$0xff]  ;;  %v307_v27 = vld [vmem:[%s952_s18 + $0xc0] sm:$0xff] }
  0x1e   : > { %443 = vmatpush.bf16.xpose.msra.mxu1 %v422_v12  ;;  %v419_v16 = vsel %vm369_vm0, %v329_v14, 0  ;;  %v328_v22 = vpack.c.bf16 %v310_v20, %v309_v19  ;;  %v308_v28 = vld [vmem:[%s952_s18 + $0xc8] sm:$0xff]  ;;  %v319_v29 = vpack.c.bf16 %v292_v26, %v291_v25  ;;  %v289_v33 = vld [vmem:[%s952_s18 + $0x30] sm:$0xff]  ;;  %v290_v34 = vld [vmem:[%s952_s18 + $0x38] sm:$0xff]  ;;  %p811_p13 = pneg %p810_p12 }
  0x1f   : > { %v392_v23 = vsel %vm369_vm0, %v320_v21, 0  ;;  %v327_v30 = vpack.c.bf16 %v308_v28, %v307_v27  ;;  %v305_v35 = vld [vmem:[%s952_s18 + $0xb0] sm:$0xff]  ;;  %v306_v36 = vld [vmem:[%s952_s18 + $0xb8] sm:$0xff]  ;;  %v318_v37 = vpack.c.bf16 %v290_v34, %v289_v33  ;;  %v287_v43 = vld [vmem:[%s952_s18 + $0x20] sm:$0xff] }
  0x20   : > { %v416_v24 = vsel %vm369_vm0, %v328_v22, 0  ;;  %v389_v31 = vsel %vm369_vm0, %v319_v29, 0  ;;  %v326_v39 = vpack.c.bf16 %v306_v36, %v305_v35  ;;  %v288_v44 = vld [vmem:[%s952_s18 + $0x28] sm:$0xff]  ;;  %v303_v45 = vld [vmem:[%s952_s18 + $0xa0] sm:$0xff]  ;;  %356 = vperm.xlu0 %789, %v338_v47   ;;  %v285_v53 = vld [vmem:[%s952_s18 + $0x10] sm:$0xff] }
  0x21   : > { %v413_v32 = vsel %vm369_vm0, %v327_v30, 0  ;;  %v386_v41 = vsel %vm369_vm0, %v318_v37, 0  ;;  %v304_v46 = vld [vmem:[%s952_s18 + $0xa8] sm:$0xff]  ;;  %v317_v49 = vpack.c.bf16 %v288_v44, %v287_v43  ;;  %v286_v54 = vld [vmem:[%s952_s18 + $0x18] sm:$0xff]  ;;  %v301_v56 = vld [vmem:[%s952_s18 + $0x90] sm:$0xff]  ;;  %346 = vperm.xlu1 %790, %v336_v55  }
  0x22   : > { %v410_v42 = vsel %vm369_vm0, %v326_v39, 0  ;;  %v325_v50 = vpack.c.bf16 %v304_v46, %v303_v45  ;;  %v302_v57 = vld [vmem:[%s952_s18 + $0x98] sm:$0xff]  ;;  %v316_v59 = vpack.c.bf16 %v286_v54, %v285_v53  ;;  %v283_v63 = vld [vmem:[%s952_s18] sm:$0xff]  ;;  %v284_v0 = vld [vmem:[%s952_s18 + $0x8] sm:$0xff] }
  0x23   : > { %v383_v51 = vsel %vm369_vm0, %v317_v49, 0  ;;  %v324_v60 = vpack.c.bf16 %v302_v57, %v301_v56  ;;  %v299_v1 = vld [vmem:[%s952_s18 + $0x80] sm:$0xff]  ;;  %v300_v2 = vld [vmem:[%s952_s18 + $0x88] sm:$0xff]  ;;  %v477_v4 = vld [vmem:[%s1090_s4 + $0x18] sm:$0xff]  ;;  %v315_v5 = vpack.c.bf16 %v284_v0, %v283_v63  ;;  %s812_s18 = scalar_lea.hbm %s1093_s7, 4 }
  0x24   : > { %v407_v52 = vsel %vm369_vm0, %v325_v50, 0  ;;  %v380_v61 = vsel %vm369_vm0, %v316_v59, 0  ;;  %v566_v3 = vld [vmem:[%s1091_s5 + $0x8] sm:$0xff]  ;;  %v323_v6 = vpack.c.bf16 %v300_v2, %v299_v1  ;;  %v567_v9 = vld [vmem:[%s1091_s5 + $0x10] sm:$0xff]  ;;  %v569_v10 = vld [vmem:[#allocation2] sm:$0x1]  ;;  %p814_p1 = scmp.lt.s32.totalorder %s812_s18, %s808_s16 }
  0x25   : > { %425 = vmatpush.bf16.xpose.msra.mxu0 %v395_v15  ;;  %v404_v62 = vsel %vm369_vm0, %v324_v60, 0  ;;  %v377_v7 = vsel %vm369_vm0, %v315_v5, 0  ;;  %v745_v11 = vld [vmem:[%s1087_s1] sm:$0xff]  ;;  %v746_v12 = vld [vmem:[%s1087_s1 + $0x8] sm:$0xff]  ;;  %v568_v49 = vld [vmem:[%s1091_s5 + $0x18] sm:$0xff] }
  0x26   : > { %444 = vmatpush.bf16.xpose.msra.mxu1 %v419_v16  ;;  %v401_v8 = vsel %vm369_vm0, %v323_v6, 0  ;;  %v747_v47 = vld [vmem:[%s1089_s3] sm:$0xff]  ;;  %v748_v50 = vld [vmem:[%s1089_s3 + $0x8] sm:$0xff]  ;;  %p815_p2 = por %p814_p1, %p813_p0 }
  0x27   : > { %v565_v48 = vld [vmem:[%s1091_s5] sm:$0xff] }
  0x28   : > { %494 = vperm.xlu0 %789, %v476_v58   ;;  %p816_p3 = pnand %p815_p2, %p811_p13 }
  0x29   : > { %499 = vperm.xlu1 %790, %v477_v4  }
  0x2d   : > { %426 = vmatpush.bf16.xpose.msra.mxu0 %v392_v23  ;;  %v474_v23 = vld [vmem:[%s1090_s4] sm:$0xff] }
  0x2e   : > { %445 = vmatpush.bf16.xpose.msra.mxu1 %v416_v24  ;;  %484 = vperm.xlu2 %791, %v474_v23  }
  0x30   : > { %577 = vperm.xlu0 %789, %v566_v3  }
  0x31   : > { %582 = vperm.xlu1 %790, %v567_v9  }
  0x35   : > { %427 = vmatpush.bf16.xpose.msra.mxu0 %v389_v31 }
  0x36   : > { %446 = vmatpush.bf16.xpose.msra.mxu1 %v413_v32  ;;  %489 = vperm.xlu2 %791, %v475_v40  }
  0x38   : > { %618 = vperm.xlu0 %789, %v569_v10  }
  0x3d   : > { %428 = vmatpush.bf16.xpose.msra.mxu0 %v386_v41 }
  0x3e   : > { %447 = vmatpush.bf16.xpose.msra.mxu1 %v410_v42  ;;  %572 = vperm.xlu2 %791, %v565_v48  }
  0x45   : > { %429 = vmatpush.bf16.xpose.msra.mxu0 %v383_v51 }
  0x46   : > { %448 = vmatpush.bf16.xpose.msra.mxu1 %v407_v52  ;;  %587 = vperm.xlu2 %791, %v568_v49  }
  0x4d   : > { %430 = vmatpush.bf16.xpose.msra.mxu0 %v380_v61 }
  0x4e   : > { %449 = vmatpush.bf16.xpose.msra.mxu1 %v404_v62 }
  0x55   : > { %431 = vmatpush.bf16.xpose.msra.mxu0 %v377_v7 }
  0x56   : > { %450 = vmatpush.bf16.xpose.msra.mxu1 %v401_v8 }
  0x5c   : > { %725 = vmatmul.msk.bf16.vlgmr.msra.gmra.mxu0 %vm369_vm0, %v745_v11 }
  0x5d   : > { %727 = vmatmul.msk.bf16.vlgmr.msra.gmra.mxu1 %vm369_vm0, %v745_v11 }
  0x6c   : > { %726 = vmatmul.msk.bf16.gmra.mxu0 %vm369_vm0, %v746_v12 }
  0x6d   : > { %728 = vmatmul.msk.bf16.gmra.mxu1 %vm369_vm0, %v746_v12 }
  0x88   : > { %v485_v51 = vpop.permute.xlu2 %484 }
  0x8a   : > { %v352_v17 = vpop.permute.xlu0 %351 }
  0x8b   : > { %v342_v18 = vpop.permute.xlu1 %341 }
  0x90   : > { %v490_v54 = vpop.permute.xlu2 %489 }
  0x92   : > { %v357_v21 = vpop.permute.xlu0 %356 }
  0x93   : > { %v347_v24 = vpop.permute.xlu1 %346 }
  0x98   : > { %v573_v1 = vpop.permute.xlu2 %572 }
  0x9a   : > { %v495_v57 = vpop.permute.xlu0 %494 }
  0x9b   : > { %v500_v58 = vpop.permute.xlu1 %499 }
  0xa2   : > { %v578_v8 = vpop.permute.xlu0 %577 }
  0xa3   : > { %v583_v12 = vpop.permute.xlu1 %582 }
  0xd9   : > { %v433_v13 = vpop.f32.mrf.mxu0 }
  0xda   : > { %v452_v14 = vpop.f32.mrf.mxu1  ;;  %v434_v32 = vadd.f32 %v433_v13, %v342_v18 }
  0xdb   : > { %v453_v35 = vadd.f32 %v452_v14, %v342_v18 }
  0xdc   : > { %v462_v43 = vmax.f32 %v434_v32, 0.0 }
  0xdd   : > { %v463_v44 = vmax.f32 %v453_v35, 0.0 }
  0xe1   : > { %v435_v15 = vpop.f32.mrf.mxu0 }
  0xe2   : > { %v454_v16 = vpop.f32.mrf.mxu1  ;;  %v436_v27 = vadd.f32 %v435_v15, %v347_v24 }
  0xe3   : > { %v455_v30 = vadd.f32 %v454_v16, %v347_v24  ;;  %v588_v24 = vpop.permute.xlu2 %587 }
  0xe4   : > { %v464_v38 = vmax.f32 %v436_v27, 0.0 }
  0xe5   : > { %v465_v41 = vmax.f32 %v455_v30, 0.0 }
  0xe6   : > { %v478_v45 = vpack.c.bf16 %v464_v38, %v462_v43 }
  0xe7   : > { %v479_v46 = vpack.c.bf16 %v465_v41, %v463_v44  ;;  %v619_v41 = vpop.permute.xlu0 %618 }
  0xe8   : > { %v621_v44 = vperm.slane %v619_v41, 0 }
  0xe9   : > { %v438_v19 = vpop.f32.mrf.mxu0 }
  0xea   : > { %v457_v20 = vpop.f32.mrf.mxu1  ;;  %v439_v22 = vadd.f32 %v438_v19, %v352_v17 }
  0xeb   : > { %v458_v25 = vadd.f32 %v457_v20, %v352_v17 }
  0xec   : > { %v466_v33 = vmax.f32 %v439_v22, 0.0 }
  0xed   : > { %v467_v36 = vmax.f32 %v458_v25, 0.0 }
  0xf1   : > { %v440_v26 = vpop.f32.mrf.mxu0 }
  0xf2   : > { %v441_v28 = vadd.f32 %v440_v26, %v357_v21  ;;  %v459_v29 = vpop.f32.mrf.mxu1 }
  0xf3   : > { %v460_v31 = vadd.f32 %v459_v29, %v357_v21 }
  0xf4   : > { %v468_v34 = vmax.f32 %v441_v28, 0.0 }
  0xf5   : > { %v469_v37 = vmax.f32 %v460_v31, 0.0 }
  0xf6   : > { %v480_v39 = vpack.c.bf16 %v468_v34, %v466_v33 }
  0xf7   : > { %v481_v42 = vpack.c.bf16 %v469_v37, %v467_v36 }
  0xf8   : > { %525 = vmatpush.bf16.msra.mxu2 %v480_v39 }
  0xf9   : > { %544 = vmatpush.bf16.msra.mxu3 %v481_v42 }
  0xfc   : > { %526 = vmatpush.bf16.msra.mxu2 %v478_v45 }
  0xfd   : > { %545 = vmatpush.bf16.msra.mxu3 %v479_v46 }
  0xff   : > { %737 = vmatmul.msk.bf16.vlgmr.msra.gmra.mxu2 %vm512_vm1, %v747_v47 }
 0x100   : > { %739 = vmatmul.msk.bf16.vlgmr.msra.gmra.mxu3 %vm512_vm1, %v747_v47  ;;  %v630_v47 = vlaneseq }
 0x102   : > { %vm632_vm3 = vcmp.lt.s32.totalorder %v630_v47, 256 }
 0x10f   : > { %738 = vmatmul.msk.bf16.gmra.mxu2 %vm512_vm1, %v748_v50 }
 0x110   : > { %740 = vmatmul.msk.bf16.gmra.mxu3 %vm512_vm1, %v748_v50 }
 0x182   : > { %v528_v52 = vpop.f32.mrf.mxu2 }
 0x183   : > { %v547_v53 = vpop.f32.mrf.mxu3  ;;  %v529_v62 = vadd.f32 %v528_v52, %v485_v51 }
 0x184   : > { %v548_v2 = vadd.f32 %v547_v53, %v485_v51 }
 0x185   : > { %v557_v6 = vmax.f32 %v529_v62, 0.0 }
 0x186   : > { %v558_v9 = vmax.f32 %v548_v2, 0.0 }
 0x187   : > { %v590_v15 = vmul.f32 %v573_v1, %v557_v6 }
 0x188   : > { %v591_v19 = vmul.f32 %v573_v1, %v558_v9 }
 0x18a   : > { %v530_v55 = vpop.f32.mrf.mxu2 }
 0x18b   : > { %v549_v56 = vpop.f32.mrf.mxu3  ;;  %v531_v59 = vadd.f32 %v530_v55, %v490_v54 }
 0x18c   : > { %v550_v60 = vadd.f32 %v549_v56, %v490_v54 }
 0x18d   : > { %v559_v4 = vmax.f32 %v531_v59, 0.0 }
 0x18e   : > { %v560_v5 = vmax.f32 %v550_v60, 0.0 }
 0x18f   : > { %v592_v11 = vmul.f32 %v578_v8, %v559_v4 }
 0x190   : > { %v593_v13 = vmul.f32 %v578_v8, %v560_v5 }
 0x191   : > { %v598_v22 = vadd.f32 %v592_v11, %v590_v15 }
 0x192   : > { %v533_v61 = vpop.f32.mrf.mxu2  ;;  %v607_v25 = vadd.f32 %v593_v13, %v591_v19 }
 0x193   : > { %v534_v63 = vadd.f32 %v533_v61, %v495_v57  ;;  %v552_v0 = vpop.f32.mrf.mxu3 }
 0x194   : > { %v553_v3 = vadd.f32 %v552_v0, %v495_v57 }
 0x195   : > { %v561_v7 = vmax.f32 %v534_v63, 0.0 }
 0x196   : > { %v562_v10 = vmax.f32 %v553_v3, 0.0 }
 0x197   : > { %v594_v16 = vmul.f32 %v583_v12, %v561_v7 }
 0x198   : > { %v595_v20 = vmul.f32 %v583_v12, %v562_v10 }
 0x199   : > { %v599_v27 = vadd.f32 %v598_v22, %v594_v16 }
 0x19a   : > { %v535_v14 = vpop.f32.mrf.mxu2  ;;  %v608_v29 = vadd.f32 %v607_v25, %v595_v20 }
 0x19b   : > { %v536_v17 = vadd.f32 %v535_v14, %v500_v58  ;;  %v554_v18 = vpop.f32.mrf.mxu3 }
 0x19c   : > { %v555_v21 = vadd.f32 %v554_v18, %v500_v58 }
 0x19d   : > { %v563_v23 = vmax.f32 %v536_v17, 0.0 }
 0x19e   : > { %v564_v26 = vmax.f32 %v555_v21, 0.0 }
 0x19f   : > { %v596_v28 = vmul.f32 %v588_v24, %v563_v23 }
 0x1a0   : > { %v597_v30 = vmul.f32 %v588_v24, %v564_v26 }
 0x1a1   : > { %v600_v31 = vadd.f32 %v599_v27, %v596_v28 }
 0x1a2   : > { %v609_v32 = vadd.f32 %v608_v29, %v597_v30 }
 0x1a3   : > { %v601_v33 = vrot.slane %v600_v31, 4 }
 0x1a4   : > { %v610_v34 = vrot.slane %v609_v32, 4 }
 0x1a5   : > { %v602_v35 = vadd.f32 %v601_v33, %v600_v31 }
 0x1a6   : > { %v611_v36 = vadd.f32 %v610_v34, %v609_v32 }
 0x1a7   : > { %v603_v37 = vrot.slane %v602_v35, 2 }
 0x1a8   : > { %v612_v38 = vrot.slane %v611_v36, 2 }
 0x1a9   : > { %v604_v39 = vadd.f32 %v603_v37, %v602_v35 }
 0x1aa   : > { %v613_v40 = vadd.f32 %v612_v38, %v611_v36 }
 0x1ab   : > { %v605_v42 = vrot.slane %v604_v39, 1 }
 0x1ac   : > { %v614_v43 = vrot.slane %v613_v40, 1 }
 0x1ad   : > { %v606_v45 = vadd.f32 %v605_v42, %v604_v39 }
 0x1ae   : > { %v615_v46 = vadd.f32 %v614_v43, %v613_v40 }
 0x1af   : > { %v622_v49 = vadd.f32 %v621_v44, %v606_v45 }
 0x1b0   : > { %v623_v48 = vadd.f32 %v621_v44, %v615_v46 }
 0x1b2   : > { %v626_v50 = vrot.slane %v623_v48, 7 }
 0x1b4   : > { %v628_v51 = vsel %vm627_vm2, %v622_v49, %v626_v50 }
 0x1b5   : > { %634 = vst.msk [vmem:[%s274_s9] sm:$0x3] %vm632_vm3, %v628_v51 }
 0x1b6   : > { %819 = shalt.err (!%p816_p3)
}
 0x1b7   : > { %749 = dma.vmem_to_hbm [thread:$0]  (%p938_p5), %s649_s10, 32, %s651_s14, %s636_s6  }
 0x1b8 PF: > { %p755_p4 = scmp.ge.s32.totalorder %s854_s29, 2  ;;  %s662_s21 = sand.u32 1, %s842_s26  }
 0x1b9   : > { %s663_s23 = scalar_lea.sflag [#allocation4], %s662_s21 }
 0x1ba   : > { %p752_p7 = pnand %p755_p4, %p942_p6 }
 0x1bc   : > { %p753_p8 = pneg %p752_p7 }
 0x1be   : > { %837 = dma.done.wait (%p753_p8), %s663_s23, 32  }
 0x1bf   : > { %839 = vsyncadd (%p753_p8), %s663_s23, 4294967264  ;;  %p19_p9 = scmp.ge.s32.totalorder %s925_s8, 4   ;;  %s1096_s26 = smov %s846_s27 }
 0x1c0   : > { %s1097_s27 = smov %s850_s28  ;;  %s1098_s28 = smov %s936_s11 }
 0x1c1   : > { %s1099_s29 = smov %s925_s8  ;;  %21 = sbr.rel (!%p19_p9) target bundleno = 6 (0x6), region = 83 }
 0x1c6   :  { %669 = vsyncpa [#allocation4], 1 }
 0x1c7   :  { %671 = vsyncpa [#allocation4 + $0x1], 1 }

</bundles_post_ra>
